<compile_context>
chip_gen: v6e
topology: v6e:2x2x1
jax: 0.10.0
libtpu: 0.0.40
codegen_flags: <defaults>
</compile_context>

<pallas_src>
import functools

import jax
import jax.numpy as jnp
from jax.experimental import pallas as pl
from jax.experimental.pallas import tpu as pltpu

_LANE = 128
# Conservative resident-weight budget: weight (x2 buffers) + double-buffered x/out tiles
# must stay under this so the variant is safe on v7x (64 MiB physical VMEM).
_VMEM_BUDGET_BYTES = 20 * 1024 * 1024
# Raised scoped-VMEM limit (v5e default is only 16 MiB); still leaves headroom on v7x.
_VMEM_LIMIT_BYTES = 48 * 1024 * 1024


def _round_up(x: int, m: int) -> int:
    return ((x + m - 1) // m) * m


def _sublane_pack(dtype) -> int:
    # Rows per packed vreg tile: f32 -> 8, bf16 -> 16, int8/fp8 -> 32.
    return max(8, 32 // jnp.dtype(dtype).itemsize)


def _pad2d(a, row_mult: int, col_mult: int):
    r, c = a.shape
    rp, cp = _round_up(r, row_mult), _round_up(c, col_mult)
    if (rp, cp) == (r, c):
        return a
    return jnp.zeros((rp, cp), a.dtype).at[:r, :c].set(a)


def _largest_tile(padded_dim: int, cap: int) -> int:
    """Largest multiple of 128 <= cap that divides padded_dim (padded_dim % 128 == 0)."""
    t = min(cap, padded_dim)
    t = (t // _LANE) * _LANE
    while padded_dim % t:
        t -= _LANE
    return t


def _matmul_resident_kernel(x_ref, w_ref, o_ref):
    # Full-K, full-N weight resident in VMEM: one MXU pass per M tile, no accumulator
    # scratch, no zero-init / finalize phases.
    o_ref[...] = jnp.dot(
        x_ref[...], w_ref[...], preferred_element_type=jnp.float32
    ).astype(o_ref.dtype)


def _matmul_tiled_kernel(x_ref, w_ref, o_ref, acc_ref):
    # Canonical M/N/K-tiled matmul with f32 VMEM accumulator; K is the innermost
    # ("arbitrary") grid axis.
    @pl.when(pl.program_id(2) == 0)
    def _():
        acc_ref[...] = jnp.zeros_like(acc_ref)

    acc_ref[...] += jnp.dot(
        x_ref[...], w_ref[...], preferred_element_type=jnp.float32
    )

    @pl.when(pl.program_id(2) == pl.num_programs(2) - 1)
    def _():
        o_ref[...] = acc_ref[...].astype(o_ref.dtype)


def _matmul_kn(x2d, w_kn, n_dim: int, *, force_tiled: bool = False, tile_cap: int = 512):
    """y[m, n] = sum_k x2d[m, k] * w_kn[k, n].

    `w_kn` is the contraction-major (K-major), already 128-padded weight.
    Returns the (m_dim, n_dim) un-padded result in x2d.dtype.
    """
    m_dim, k_dim = x2d.shape
    k_pad, n_pad = w_kn.shape
    out_dtype = x2d.dtype
    x_item = jnp.dtype(x2d.dtype).itemsize
    w_item = jnp.dtype(w_kn.dtype).itemsize

    # tm rounded to the dtype sublane pack, capped at 512 (MXU stays the binding unit).
    tm = min(512, _round_up(m_dim, _sublane_pack(out_dtype)))
    m_pad = _round_up(m_dim, tm)

    x_p = x2d
    if (m_pad, k_pad) != (m_dim, k_dim):
        x_p = jnp.zeros((m_pad, k_pad), x2d.dtype).at[:m_dim, :k_dim].set(x2d)

    # Footprint of the resident-weight variant (inputs are double-buffered by default).
    resident_bytes = (
        2 * k_pad * n_pad * w_item        # weight buffers
        + 2 * tm * k_pad * x_item         # streamed x tiles
        + 2 * tm * n_pad * x_item         # output tiles
    )
    use_resident = (not force_tiled) and resident_bytes <= _VMEM_BUDGET_BYTES

    if use_resident:
        grid = (m_pad // tm,)
        cost = pl.CostEstimate(
            flops=2 * m_pad * n_pad * k_pad,
            transcendentals=0,
            bytes_accessed=(m_pad * k_pad * x_item        # x streamed once
                            + k_pad * n_pad * w_item      # weight fetched once
                            + m_pad * n_pad * x_item),    # output written once
        )
        out_p = pl.pallas_call(
            _matmul_resident_kernel,
            out_shape=jax.ShapeDtypeStruct((m_pad, n_pad), out_dtype),
            grid_spec=pltpu.PrefetchScalarGridSpec(
                num_scalar_prefetch=0,
                grid=grid,
                in_specs=[
                    pl.BlockSpec((tm, k_pad), lambda i: (i, 0)),
                    pl.BlockSpec((k_pad, n_pad), lambda i: (0, 0)),  # resident weight
                ],
                out_specs=pl.BlockSpec((tm, n_pad), lambda i: (i, 0)),
            ),
            compiler_params=pltpu.CompilerParams(
                dimension_semantics=("parallel",),
                vmem_limit_bytes=_VMEM_LIMIT_BYTES,
            ),
            cost_estimate=cost,
        )(x_p, w_kn)
    else:
        # Tiled fallback for weights that don't fit VMEM: 512-aligned tiles chosen as
        # divisors of the 128-padded dims (no over-padding to 512 when dim % 256 != 0).
        tk = _largest_tile(k_pad, tile_cap)
        tn = _largest_tile(n_pad, tile_cap)
        grid = (m_pad // tm, n_pad // tn, k_pad // tk)
        cost = pl.CostEstimate(
            flops=2 * m_pad * n_pad * k_pad,
            transcendentals=0,
            bytes_accessed=(m_pad * k_pad * x_item * grid[1]      # x re-streamed per N tile
                            + k_pad * n_pad * w_item * grid[0]    # weight re-streamed per M tile
                            + m_pad * n_pad * x_item),
        )
        out_p = pl.pallas_call(
            _matmul_tiled_kernel,
            out_shape=jax.ShapeDtypeStruct((m_pad, n_pad), out_dtype),
            grid_spec=pltpu.PrefetchScalarGridSpec(
                num_scalar_prefetch=0,
                grid=grid,
                in_specs=[
                    pl.BlockSpec((tm, tk), lambda i, j, k: (i, k)),
                    pl.BlockSpec((tk, tn), lambda i, j, k: (k, j)),
                ],
                out_specs=pl.BlockSpec((tm, tn), lambda i, j, k: (i, j)),
                scratch_shapes=[pltpu.VMEM((tm, tn), jnp.float32)],
            ),
            compiler_params=pltpu.CompilerParams(
                dimension_semantics=("parallel", "parallel", "arbitrary"),
                vmem_limit_bytes=_VMEM_LIMIT_BYTES,
            ),
            cost_estimate=cost,
        )(x_p, w_kn)

    return out_p[:m_dim, :n_dim]


class LinearTranspose:
    """JAX/Pallas port of the PyTorch LinearTranspose module.

    The weight is converted ONCE at construction into two contraction-major (K-major),
    128-padded layouts so both forward paths are a plain A @ B on the MXU (rhs contracts
    dim 0 — no per-tile XLU transpose, no per-call padding / transpose of the weight).
    """

    def __init__(self, weight):
        weight = jnp.asarray(weight)
        self.out_features, self.in_features = weight.shape
        # transpose=False: y = x @ W.T  -> rhs = W.T, K = in_features rows.
        self._w_fwd = _pad2d(weight.T, _LANE, _LANE)
        # transpose=True : y = x @ W    -> rhs = W,   K = out_features rows.
        self._w_tr = _pad2d(weight, _LANE, _LANE)

    def __call__(self, x, transpose: bool = False, *,
                 force_tiled: bool = False, tile_cap: int = 512):
        if transpose:
            k_dim, n_dim, w_kn = self.out_features, self.in_features, self._w_tr
        else:
            k_dim, n_dim, w_kn = self.in_features, self.out_features, self._w_fwd

        orig_shape = x.shape
        assert orig_shape[-1] == k_dim, (orig_shape, (self.out_features, self.in_features), transpose)
        m_dim = 1
        for d in orig_shape[:-1]:
            m_dim *= d
        x2d = x.reshape(m_dim, k_dim)

        out2d = _matmul_kn(x2d, w_kn, n_dim, force_tiled=force_tiled, tile_cap=tile_cap)
        return out2d.reshape(*orig_shape[:-1], n_dim)


if __name__ == "__main__":
    key = jax.random.PRNGKey(0)
    k_w, k_x1, k_x2, k_w2, k_x3, k_w3, k_x4 = jax.random.split(key, 7)

    # --- small shapes consistent with the module ---
    batch, seq = 2, 8
    in_features, out_features = 32, 64

    # Deterministic parameter init (module uses torch.empty; filled deterministically
    # here since this is a synthetic kernel, not a checkpoint).
    weight = jax.random.normal(k_w, (out_features, in_features), dtype=jnp.float32) * 0.02
    module = LinearTranspose(weight)

    # transpose=False path: x has in_features on the last axis.
    x_fwd = jax.random.normal(k_x1, (batch, seq, in_features), dtype=jnp.float32)
    y_fwd = module(x_fwd, transpose=False)
    jax.block_until_ready(y_fwd)

    # transpose=True path: x has out_features on the last axis.
    x_t = jax.random.normal(k_x2, (batch, seq, out_features), dtype=jnp.float32)
    y_t = module(x_t, transpose=True)
    jax.block_until_ready(y_t)

    ref_fwd = jnp.einsum("bsi,oi->bso", x_fwd, weight)
    ref_t = jnp.einsum("bso,oi->bsi", x_t, weight)
    assert y_fwd.shape == (batch, seq, out_features)
    assert y_t.shape == (batch, seq, in_features)
    assert jnp.allclose(y_fwd, ref_fwd, atol=1e-5, rtol=1e-5)
    assert jnp.allclose(y_t, ref_t, atol=1e-5, rtol=1e-5)

    # Larger case: resident-weight variant (weight fits VMEM) and the tiled fallback
    # (forced, with small tiles so the multi-step K reduction / accumulator path runs).
    in2, out2 = 384, 512
    weight2 = jax.random.normal(k_w2, (out2, in2), dtype=jnp.float32) * 0.02
    module2 = LinearTranspose(weight2)
    x2 = jax.random.normal(k_x3, (batch, seq, in2), dtype=jnp.float32)
    ref2 = jnp.einsum("bsi,oi->bso", x2, weight2)

    y2_res = module2(x2, transpose=False)
    jax.block_until_ready(y2_res)
    assert jnp.allclose(y2_res, ref2, atol=1e-4, rtol=1e-4)

    y2_tiled = module2(x2, transpose=False, force_tiled=True, tile_cap=128)
    jax.block_until_ready(y2_tiled)
    assert jnp.allclose(y2_tiled, ref2, atol=1e-4, rtol=1e-4)

    y2_t = module2(jnp.swapaxes(ref2, 0, 0), transpose=True)  # (b, s, out2) -> (b, s, in2)
    jax.block_until_ready(y2_t)
    ref2_t = jnp.einsum("bso,oi->bsi", ref2, weight2)
    assert jnp.allclose(y2_t, ref2_t, atol=1e-4, rtol=1e-4)

    # bf16 operands with f32 accumulation (halved HBM/VMEM traffic, full-rate MXU).
    weight3 = (jax.random.normal(k_w3, (out2, in2), dtype=jnp.float32) * 0.02).astype(jnp.bfloat16)
    module3 = LinearTranspose(weight3)
    x3 = jax.random.normal(k_x4, (batch, seq, in2), dtype=jnp.float32).astype(jnp.bfloat16)
    y3 = module3(x3, transpose=False)
    jax.block_until_ready(y3)
    ref3 = jnp.einsum("bsi,oi->bso", x3.astype(jnp.float32), weight3.astype(jnp.float32))
    assert jnp.allclose(y3.astype(jnp.float32), ref3, atol=3e-2, rtol=3e-2)

    print("KERNEL_OK")
</pallas_src>

<mosaic_0001>
module attributes {stable_mosaic.version = 11 : i64} {
  func.func @_matmul_resident_kernel(%arg0: i32, %arg1: memref<16x128xf32, #tpu.memory_space<vmem>>, %arg2: memref<128x128xf32, #tpu.memory_space<vmem>>, %arg3: memref<16x128xf32, #tpu.memory_space<vmem>>) attributes {dimension_semantics = [#tpu.dimension_semantics<parallel>], iteration_bounds = array<i64: 1>, scalar_prefetch = 0 : i64, scratch_operands = 0 : i64, tpu.core_type = #tpu.core_type<tc>, window_params = [{transform_indices = @transform_0, window_bounds = array<i64: 16, 128>}, {pipeline_mode = #tpu.pipeline_mode<synchronous>, transform_indices = @transform_1, window_bounds = array<i64: 128, 128>}, {transform_indices = @transform_2, window_bounds = array<i64: 16, 128>}]} {
    %c0 = arith.constant 0 : index
    %c0_0 = arith.constant 0 : index
    %0 = vector.load %arg1[%c0, %c0_0] : memref<16x128xf32, #tpu.memory_space<vmem>>, vector<16x128xf32>
    %c0_1 = arith.constant 0 : index
    %c0_2 = arith.constant 0 : index
    %1 = vector.load %arg2[%c0_1, %c0_2] : memref<128x128xf32, #tpu.memory_space<vmem>>, vector<128x128xf32>
    %cst = arith.constant dense<0.000000e+00> : vector<16x128xf32>
    %2 = tpu.matmul %0, %1, %cst {dimension_numbers = #tpu.dot_dimension_numbers<[1], [0], [0], [1], [0, 0, 1, 1], [], []>} : vector<16x128xf32>, vector<128x128xf32>, vector<16x128xf32> -> vector<16x128xf32>
    %c0_3 = arith.constant 0 : index
    %c0_4 = arith.constant 0 : index
    %3 = vector.load %arg3[%c0_3, %c0_4] : memref<16x128xf32, #tpu.memory_space<vmem>>, vector<16x128xf32>
    tpu.vector_store %arg3[%c0_3, %c0_4], %2 {strides = array<i32>} : memref<16x128xf32, #tpu.memory_space<vmem>>, vector<16x128xf32>,
    return
  }
  func.func @transform_0(%arg0: i32) -> (i32, i32) {
    %c0_i32 = arith.constant 0 : i32
    %c0_i32_0 = arith.constant 0 : i32
    return %arg0, %c0_i32 : i32, i32
  }
  func.func @transform_1(%arg0: i32) -> (i32, i32) {
    %c0_i32 = arith.constant 0 : i32
    %c0_i32_0 = arith.constant 0 : i32
    %c0_i32_1 = arith.constant 0 : i32
    return %c0_i32, %c0_i32_0 : i32, i32
  }
  func.func @transform_2(%arg0: i32) -> (i32, i32) {
    %c0_i32 = arith.constant 0 : i32
    %c0_i32_0 = arith.constant 0 : i32
    return %arg0, %c0_i32 : i32, i32
  }
}

</mosaic_0001>

<bundles_post_ra>
// kernel: tpu_custom_call.1
= control target key start
LH: loop header
LB: loop body
LE: loop exit
PB: predicated region body
PF: predicated region fallthrough
CT: control target
= control target key end

     0   :  { %7 = vsyncpa [#allocation3], 0  ;;  %s315_s0 = inlined_call_operand.hbm [shape: f32[16,128], index: 0, kind: input, shape index: {}]   ;;  %s316_s1 = inlined_call_operand.hbm [shape: f32[128,128], index: 1, kind: input, shape index: {}]   ;;  %s317_s2 = inlined_call_operand.hbm [shape: f32[16,128], index: 2, kind: output, shape index: {}]  }
   0x1   :  { %8 = vsyncpa [#allocation6], 0 }
   0x2   :  { %9 = vsyncpa [#allocation4], 0  ;;  %s277_s9 = smov [#allocation2]  }
   0x3   :  { %s15_s10 = sshll.u32 %s277_s9, 4  ;;  %s16_s10 = int_to_ptr.vmem [resolvable:$true] %s15_s10 }
   0x4   :  { %s219_s11 = scalar_lea.vmem %s16_s10, 256  ;;  %p224_p1 = scmp.lt.s32.totalorder %s16_s10, %s16_s10 }
   0x5   :  { %p220_p0 = scmp.ne.s32.totalorder %s16_s10, %s219_s11  ;;  %p225_p2 = scmp.lt.s32.totalorder %s219_s11, %s219_s11 }
   0x7   :  { %p226_p3 = por %p225_p2, %p224_p1 }
   0x9   :  { %p227_p4 = pnand %p226_p3, %p220_p0 }
   0xb   :  { %230 = shalt.err (!%p227_p4)
}
   0xc   :  { %s278_s12 = smov 128   ;;  %s279_s13 = smov 8  }
   0xd   :  { %21 = dma.hbm_to_vmem [thread:$0]  %s315_s0, 256, %s16_s10, [#allocation3], %s278_s12, %s278_s12, %s279_s13  }
   0xe   :  { %s280_s16 = smov [#allocation5]  }
   0xf   :  { %s27_s17 = sshll.u32 %s280_s16, 4  ;;  %s28_s17 = int_to_ptr.vmem [resolvable:$true] %s27_s17 }
  0x10   :  { %s239_s18 = scalar_lea.vmem %s28_s17, 2048  ;;  %p244_p6 = scmp.lt.s32.totalorder %s28_s17, %s28_s17 }
  0x11   :  { %p240_p5 = scmp.ne.s32.totalorder %s28_s17, %s239_s18  ;;  %p245_p7 = scmp.lt.s32.totalorder %s239_s18, %s239_s18 }
  0x13   :  { %p246_p8 = por %p245_p7, %p244_p6 }
  0x15   :  { %p247_p9 = pnand %p246_p8, %p240_p5 }
  0x17   :  { %250 = shalt.err (!%p247_p9)
}
  0x18   :  { %33 = dma.hbm_to_vmem [thread:$0]  %s316_s1, 2048, %s28_s17, [#allocation6], %s278_s12, %s278_s12, %s279_s13  }
  0x19   :  { %271 = dma.done.wait [#allocation3], 256  }
  0x1a   :  { %272 = vsyncadd [#allocation3], 4294967040 }
  0x1b   :  { %273 = dma.done.wait [#allocation6], 2048  }
  0x1c   :  { %274 = vsyncadd [#allocation6], 4294965248  ;;  %v57_v0 = vld [vmem:[#allocation5 + $0x78] sm:$0xff]  ;;  %v56_v1 = vld [vmem:[#allocation5 + $0x70] sm:$0xff]  ;;  %s281_s0 = smov [#allocation7]  }
  0x1d   :  { %171 = vmatprep.subr.mxu0 %v57_v0  ;;  %v55_v2 = vld [vmem:[#allocation5 + $0x68] sm:$0xff]  ;;  %v54_v3 = vld [vmem:[#allocation5 + $0x60] sm:$0xff]  ;;  %v40_v4 = vld [vmem:[#allocation2] sm:$0xff]  ;;  %s140_s1 = sshll.u32 %s281_s0, 4  ;;  %s141_s1 = int_to_ptr.vmem [resolvable:$true] %s140_s1 }
  0x1e   :  { %172 = vmatpush3.msra.mxu0 %v57_v0  ;;  %v53_v5 = vld [vmem:[#allocation5 + $0x58] sm:$0xff]  ;;  %203 = vmatprep.mubr.f32.mxu0 %v40_v4  ;;  %v52_v6 = vld [vmem:[#allocation5 + $0x50] sm:$0xff]  ;;  %v51_v7 = vld [vmem:[#allocation5 + $0x48] sm:$0xff]  ;;  %s251_s21 = scalar_lea.vmem %s141_s1, 256  ;;  %p256_p11 = scmp.lt.s32.totalorder %s141_s1, %s141_s1 }
  0x1f   :  { %173 = vmatprep.subr.mxu0 %v56_v1  ;;  %v50_v8 = vld [vmem:[#allocation5 + $0x40] sm:$0xff]  ;;  %v49_v9 = vld [vmem:[#allocation5 + $0x38] sm:$0xff]  ;;  %v48_v10 = vld [vmem:[#allocation5 + $0x30] sm:$0xff]  ;;  %p252_p10 = scmp.ne.s32.totalorder %s141_s1, %s251_s21  ;;  %p257_p12 = scmp.lt.s32.totalorder %s251_s21, %s251_s21 }
  0x20   :  { %174 = vmatpush3.msra.mxu0 %v56_v1  ;;  %v47_v11 = vld [vmem:[#allocation5 + $0x28] sm:$0xff]  ;;  %v46_v12 = vld [vmem:[#allocation5 + $0x20] sm:$0xff]  ;;  %v45_v13 = vld [vmem:[#allocation5 + $0x18] sm:$0xff] }
  0x21   :  { %175 = vmatprep.subr.mxu0 %v55_v2  ;;  %v44_v14 = vld [vmem:[#allocation5 + $0x10] sm:$0xff]  ;;  %v43_v15 = vld [vmem:[#allocation5 + $0x8] sm:$0xff]  ;;  %v42_v16 = vld [vmem:[#allocation5] sm:$0xff]  ;;  %p258_p13 = por %p257_p12, %p256_p11 }
  0x22   :  { %176 = vmatpush3.msra.mxu0 %v55_v2  ;;  %v41_v17 = vld [vmem:[#allocation2 + $0x8] sm:$0xff] }
  0x23   :  { %177 = vmatprep.subr.mxu0 %v54_v3  ;;  %p259_p0 = pnand %p258_p13, %p252_p10 }
  0x24   :  { %178 = vmatpush3.msra.mxu0 %v54_v3 }
  0x25   :  { %179 = vmatprep.subr.mxu0 %v53_v5 }
  0x26   :  { %180 = vmatpush3.msra.mxu0 %v53_v5 }
  0x27   :  { %181 = vmatprep.subr.mxu0 %v52_v6 }
  0x28   :  { %182 = vmatpush3.msra.mxu0 %v52_v6 }
  0x29   :  { %183 = vmatprep.subr.mxu0 %v51_v7 }
  0x2a   :  { %184 = vmatpush3.msra.mxu0 %v51_v7 }
  0x2b   :  { %185 = vmatprep.subr.mxu0 %v50_v8 }
  0x2c   :  { %186 = vmatpush3.msra.mxu0 %v50_v8 }
  0x2d   :  { %187 = vmatprep.subr.mxu0 %v49_v9 }
  0x2e   :  { %188 = vmatpush3.msra.mxu0 %v49_v9 }
  0x2f   :  { %189 = vmatprep.subr.mxu0 %v48_v10 }
  0x30   :  { %190 = vmatpush3.msra.mxu0 %v48_v10 }
  0x31   :  { %191 = vmatprep.subr.mxu0 %v47_v11 }
  0x32   :  { %192 = vmatpush3.msra.mxu0 %v47_v11 }
  0x33   :  { %193 = vmatprep.subr.mxu0 %v46_v12 }
  0x34   :  { %194 = vmatpush3.msra.mxu0 %v46_v12 }
  0x35   :  { %195 = vmatprep.subr.mxu0 %v45_v13 }
  0x36   :  { %196 = vmatpush3.msra.mxu0 %v45_v13 }
  0x37   :  { %197 = vmatprep.subr.mxu0 %v44_v14 }
  0x38   :  { %198 = vmatpush3.msra.mxu0 %v44_v14 }
  0x39   :  { %199 = vmatprep.subr.mxu0 %v43_v15 }
  0x3a   :  { %200 = vmatpush3.msra.mxu0 %v43_v15 }
  0x3b   :  { %201 = vmatprep.subr.mxu0 %v42_v16 }
  0x3c   :  { %202 = vmatpush3.msra.mxu0 %v42_v16 }
  0x3d   :  { %204 = vmatmul.mubr.f32.vlgmr.msra.gmra.mxu0 %v41_v17 }
  0xfd   :  { %v205_v18 = vpop.f32.mrf.mxu0 }
  0xfe   :  { %134 = vst [vmem:[#allocation7 + $0x8] sm:$0xff] %v205_v18 }
  0xff   :  { %v124_v19 = vpop.f32.mrf.mxu0 }
 0x100   :  { %133 = vst [vmem:[#allocation7] sm:$0xff] %v124_v19 }
 0x101   :  { %262 = shalt.err (!%p259_p0)
}
 0x102   :  { %146 = dma.vmem_to_hbm [thread:$0]  %s141_s1, 256, %s317_s2, [#allocation4], %s278_s12, %s278_s12, %s279_s13  }
 0x103   :  { %275 = dma.done.wait [#allocation4], 256  }
 0x104   :  { %276 = vsyncadd [#allocation4], 4294967040 }
 0x105   :  { %150 = vsyncpa [#allocation3], 1 }
 0x106   :  { %151 = vsyncpa [#allocation6], 1 }
 0x107   :  { %152 = vsyncpa [#allocation4], 1 }

</bundles_post_ra>
